<compile_context>
chip_gen: v7x
topology: tpu7x:2x2x1
jax: 0.10.0
libtpu: 0.0.40
codegen_flags: <defaults>
</compile_context>

<pallas_src>
import functools

import jax
import jax.numpy as jnp
from jax import lax
from jax.experimental import pallas as pl
from jax.experimental.pallas import tpu as pltpu

LANE = 128  # pad output features to a full lane width for unmasked stores


def _linear_clamp_kernel(x_ref, w_ref, b_ref, o_ref, *, apply_clamps):
    # x_ref: (M, K) f32   w_ref: (K, N_pad) bf16   b_ref: (1, N_pad) f32
    # o_ref: (M, N_pad) f32
    x = x_ref[...].astype(jnp.bfloat16)
    w = w_ref[...]  # already bf16, already (K, N_pad): canonical MXU feed
    y = lax.dot_general(
        x, w,
        dimension_numbers=(((1,), (0,)), ((), ())),
        preferred_element_type=jnp.float32,
    )
    y = y + b_ref[...]                 # bias broadcast over rows (f32 epilogue)
    if apply_clamps:
        y = jnp.maximum(y, 3.0)        # torch.clamp_min(v1, 3)
        y = jnp.minimum(y, -3.0)       # torch.clamp_max(v2, -3)
    o_ref[...] = y.astype(o_ref.dtype)


def prepare_params(weight, bias):
    """One-time parameter prep: pad to 128 lanes, transpose to (K, N_pad), cast to bf16."""
    out_f, k = weight.shape
    n_pad = max(LANE, ((out_f + LANE - 1) // LANE) * LANE)
    w_pad = (jnp.zeros((k, n_pad), dtype=jnp.bfloat16)
             .at[:, :out_f].set(weight.T.astype(jnp.bfloat16)))
    b_pad = (jnp.zeros((1, n_pad), dtype=jnp.float32)
             .at[0, :out_f].set(bias.astype(jnp.float32)))
    return w_pad, b_pad, out_f


@functools.partial(jax.jit, static_argnames=("out_f", "apply_clamps"))
def linear_clamp(x, w_pad, b_pad, *, out_f, apply_clamps=True):
    """x: (N, C, H, in_features); w_pad: (K, N_pad) bf16; b_pad: (1, N_pad) f32."""
    n, c, h, k = x.shape
    m = n * c * h
    n_pad = w_pad.shape[1]
    x2d = x.reshape(m, k)

    flops = 2 * m * k * out_f
    bytes_accessed = 4 * m * k + 2 * n_pad * k + 4 * n_pad + 4 * m * n_pad

    kernel = functools.partial(_linear_clamp_kernel, apply_clamps=apply_clamps)
    out2d = pl.pallas_call(
        kernel,
        out_shape=jax.ShapeDtypeStruct((m, n_pad), jnp.float32),
        # Ungridded: single invocation, full-array blocks resident in VMEM.
        in_specs=[
            pl.BlockSpec(memory_space=pltpu.MemorySpace.VMEM),
            pl.BlockSpec(memory_space=pltpu.MemorySpace.VMEM),
            pl.BlockSpec(memory_space=pltpu.MemorySpace.VMEM),
        ],
        out_specs=pl.BlockSpec(memory_space=pltpu.MemorySpace.VMEM),
        cost_estimate=pl.CostEstimate(
            flops=int(flops), transcendentals=0,
            bytes_accessed=int(bytes_accessed)),
    )(x2d, w_pad, b_pad)

    # Drop padded lanes; restore NCH layout with the new feature dim.
    return out2d[:, :out_f].reshape(n, c, h, out_f)


if __name__ == "__main__":
    key = jax.random.PRNGKey(0)
    kx, kw, kb = jax.random.split(key, 3)

    # Shapes consistent with the reference module: x = randn(1, 3, 32, 32).
    in_features = 32
    out_features = 32
    x = jax.random.normal(kx, (1, 3, 32, in_features), dtype=jnp.float32)

    # Deterministic synthetic linear-layer parameters (in=32 -> out=32).
    weight = jax.random.normal(kw, (out_features, in_features), dtype=jnp.float32) * 0.1
    bias = jax.random.normal(kb, (out_features,), dtype=jnp.float32) * 0.1

    # One-time parameter prep (hoisted out of the call path).
    w_pad, b_pad, out_f = prepare_params(weight, bias)

    # --- faithful forward pass (matmul + bias + clamp_min(3) + clamp_max(-3)) ---
    out = linear_clamp(x, w_pad, b_pad, out_f=out_f, apply_clamps=True)
    out = jax.block_until_ready(out)

    ref = jnp.minimum(
        jnp.maximum(jnp.einsum("nchk,ok->ncho", x, weight) + bias, 3.0), -3.0)
    assert out.shape == (1, 3, 32, out_features)
    assert jnp.allclose(out, ref, atol=1e-5), "mismatch vs clamped reference"

    # --- validation with clamps disabled: catches transposed-weight / wrong
    #     contraction / bias bugs that the constant -3 output would mask ---
    lin = linear_clamp(x, w_pad, b_pad, out_f=out_f, apply_clamps=False)
    lin = jax.block_until_ready(lin)
    x_bf = x.reshape(-1, in_features).astype(jnp.bfloat16)
    w_bf = weight.T.astype(jnp.bfloat16)
    ref_lin = (jnp.dot(x_bf, w_bf, preferred_element_type=jnp.float32)
               + bias).reshape(1, 3, 32, out_features)
    assert jnp.allclose(lin, ref_lin, atol=1e-3, rtol=1e-3), "mismatch vs linear reference"

    print("KERNEL_OK")
</pallas_src>

<mosaic_0001>
module attributes {stable_mosaic.version = 11 : i64} {
  func.func @_linear_clamp_kernel(%arg0: memref<96x32xf32, #tpu.memory_space<vmem>>, %arg1: memref<32x128xbf16, #tpu.memory_space<vmem>>, %arg2: memref<1x128xf32, #tpu.memory_space<vmem>>, %arg3: memref<96x128xf32, #tpu.memory_space<vmem>>) attributes {dimension_semantics = [], scalar_prefetch = 0 : i64, scratch_operands = 0 : i64, tpu.core_type = #tpu.core_type<tc>} {
    %c0 = arith.constant 0 : index
    %c0_0 = arith.constant 0 : index
    %0 = vector.load %arg0[%c0, %c0_0] : memref<96x32xf32, #tpu.memory_space<vmem>>, vector<96x32xf32>
    %1 = arith.truncf %0 : vector<96x32xf32> to vector<96x32xbf16>
    %c0_1 = arith.constant 0 : index
    %c0_2 = arith.constant 0 : index
    %2 = vector.load %arg1[%c0_1, %c0_2] : memref<32x128xbf16, #tpu.memory_space<vmem>>, vector<32x128xbf16>
    %cst = arith.constant dense<0.000000e+00> : vector<96x128xf32>
    %3 = tpu.matmul %1, %2, %cst {dimension_numbers = #tpu.dot_dimension_numbers<[1], [0], [0], [1], [0, 0, 1, 1], [], []>} : vector<96x32xbf16>, vector<32x128xbf16>, vector<96x128xf32> -> vector<96x128xf32>
    %c0_3 = arith.constant 0 : index
    %c0_4 = arith.constant 0 : index
    %4 = vector.load %arg2[%c0_3, %c0_4] : memref<1x128xf32, #tpu.memory_space<vmem>>, vector<1x128xf32>
    %5 = vector.broadcast %4 : vector<1x128xf32> to vector<96x128xf32>
    %6 = arith.addf %3, %5 : vector<96x128xf32>
    %cst_5 = arith.constant 3.000000e+00 : f32
    %7 = vector.broadcast %cst_5 : f32 to vector<96x128xf32>
    %8 = arith.maximumf %6, %7 : vector<96x128xf32>
    %cst_6 = arith.constant -3.000000e+00 : f32
    %9 = vector.broadcast %cst_6 : f32 to vector<96x128xf32>
    %10 = arith.minimumf %8, %9 : vector<96x128xf32>
    %c0_7 = arith.constant 0 : index
    %c0_8 = arith.constant 0 : index
    %11 = vector.load %arg3[%c0_7, %c0_8] : memref<96x128xf32, #tpu.memory_space<vmem>>, vector<96x128xf32>
    tpu.vector_store %arg3[%c0_7, %c0_8], %10 {strides = array<i32>} : memref<96x128xf32, #tpu.memory_space<vmem>>, vector<96x128xf32>,
    return
  }
}

</mosaic_0001>

<bundles_post_ra>
// kernel: linear_clamp.1
= control target key start
LH: loop header
LB: loop body
LE: loop exit
PB: predicated region body
PF: predicated region fallthrough
CT: control target
= control target key end

     0   :  { %8 = vsyncpa [#allocation3], 0  ;;  %s435_s0 = inlined_call_operand.hbm [shape: f32[96,32], index: 0, kind: input, shape index: {}]   ;;  %s436_s1 = inlined_call_operand.hbm [shape: bf16[32,128], index: 1, kind: input, shape index: {}]   ;;  %s437_s2 = inlined_call_operand.vmem [shape: f32[1,128], index: 2, kind: input, shape index: {}]   ;;  %s438_s3 = inlined_call_operand.hbm [shape: f32[96,128], index: 3, kind: output, shape index: {}]  }
   0x1   :  { %9 = vsyncpa [#allocation6], 0 }
   0x2   :  { %10 = vsyncpa [#allocation4], 0  ;;  %s357_s12 = smov [#allocation2]   ;;  %s285_s16 = scalar_lea.hbm %s435_s0, 1536 }
   0x3   :  { %s16_s13 = sshll.u32 %s357_s12, 4  ;;  %p286_p0 = scmp.ne.s32.totalorder %s435_s0, %s285_s16  ;;  %s17_s13 = int_to_ptr.vmem [resolvable:$true] %s16_s13 }
   0x4   :  { %p289_p1 = scmp.lt.u32.totalorder %s285_s16, %s435_s0 }
   0x6   :  { %p291_p2 = pnand %p289_p1, %p286_p0 }
   0x8   :  { %294 = shalt.err (!%p291_p2)
}
   0x9   :  { %s295_s21 = scalar_lea.vmem %s17_s13, 1536  ;;  %p300_p4 = scmp.lt.s32.totalorder %s17_s13, %s17_s13 }
   0xa   :  { %p296_p3 = scmp.ne.s32.totalorder %s17_s13, %s295_s21  ;;  %p301_p5 = scmp.lt.s32.totalorder %s295_s21, %s295_s21 }
   0xc   :  { %p302_p6 = por %p301_p5, %p300_p4 }
   0xe   :  { %p303_p7 = pnand %p302_p6, %p296_p3 }
  0x10   :  { %306 = shalt.err (!%p303_p7)
}
  0x11   :  { %s358_s22 = smov 128   ;;  %s359_s23 = smov 8  }
  0x12   :  { %22 = dma.hbm_to_vmem [thread:$0]  %s435_s0, 1536, %s17_s13, [#allocation3], %s358_s22, %s358_s22, %s359_s23  }
  0x13   :  { %s360_s26 = smov [#allocation5]   ;;  %s307_s30 = scalar_lea.hbm %s436_s1, 256 }
  0x14   :  { %s28_s27 = sshll.u32 %s360_s26, 4  ;;  %p308_p8 = scmp.ne.s32.totalorder %s436_s1, %s307_s30  ;;  %s29_s27 = int_to_ptr.vmem [resolvable:$true] %s28_s27 }
  0x15   :  { %p311_p9 = scmp.lt.u32.totalorder %s307_s30, %s436_s1 }
  0x17   :  { %p313_p10 = pnand %p311_p9, %p308_p8 }
  0x19   :  { %316 = shalt.err (!%p313_p10)
}
  0x1a   :  { %s317_s8 = scalar_lea.vmem %s29_s27, 256  ;;  %p322_p12 = scmp.lt.s32.totalorder %s29_s27, %s29_s27 }
  0x1b   :  { %p318_p11 = scmp.ne.s32.totalorder %s29_s27, %s317_s8  ;;  %p323_p13 = scmp.lt.s32.totalorder %s317_s8, %s317_s8 }
  0x1d   :  { %p324_p0 = por %p323_p13, %p322_p12 }
  0x1f   :  { %p325_p1 = pnand %p324_p0, %p318_p11 }
  0x21   :  { %328 = shalt.err (!%p325_p1)
}
  0x22   :  { %s361_s0 = smov 64   ;;  %s362_s9 = smov 4  }
  0x23   :  { %34 = dma.hbm_to_vmem [thread:$0]  %s436_s1, 256, %s29_s27, [#allocation6], %s361_s0, %s361_s0, %s362_s9  }
  0x24   :  { %351 = dma.done.wait [#allocation3], 1536  }
  0x25   :  { %352 = vsyncadd [#allocation3], 4294965760 }
  0x26   :  { %353 = dma.done.wait [#allocation6], 256  }
  0x27   :  { %354 = vsyncadd [#allocation6], 4294967040  ;;  %v283_v0 = vld [vmem:[#allocation5] sm:$0xff]   ;;  %v284_v1 = vld [vmem:[#allocation5 + $0x8] sm:$0xff]   ;;  %vm85_vm0 = vcmask 261120  }
  0x28   :  { %272 = vmatprep.subr.bf16.mxu1 %v283_v0  ;;  %256 = vmatprep.subr.bf16.mxu0 %v283_v0  ;;  %v48_v2 = vld [vmem:[#allocation2 + $0x20] sm:$0xff]  ;;  %v49_v3 = vld [vmem:[#allocation2 + $0x28] sm:$0xff]  ;;  %v50_v4 = vld [vmem:[#allocation2 + $0x30] sm:$0xff] }
  0x29   :  { %274 = vmatpush3.bf16.msra.mxu1 %v283_v0  ;;  %257 = vmatpush3.bf16.msra.mxu0 %v283_v0  ;;  %v58_v5 = vpack.c.bf16 %v49_v3, %v48_v2  ;;  %v51_v6 = vld [vmem:[#allocation2 + $0x38] sm:$0xff]  ;;  %v44_v7 = vld [vmem:[#allocation2] sm:$0xff]  ;;  %v45_v8 = vld [vmem:[#allocation2 + $0x8] sm:$0xff] }
  0x2a   :  { %273 = vmatprep.subr.bf16.mxu1 %v284_v1  ;;  %258 = vmatprep.subr.bf16.mxu0 %v284_v1  ;;  %v56_v9 = vpack.c.bf16 %v45_v8, %v44_v7  ;;  %v46_v10 = vld [vmem:[#allocation2 + $0x10] sm:$0xff]  ;;  %v47_v11 = vld [vmem:[#allocation2 + $0x18] sm:$0xff]  ;;  %v52_v12 = vld [vmem:[#allocation2 + $0x40] sm:$0xff]  ;;  %v59_v14 = vpack.c.bf16 %v51_v6, %v50_v4 }
  0x2b   :  { %264 = vmatprep.mubr.msk.bf16.mxu1 %vm85_vm0, %v58_v5  ;;  %v53_v13 = vld [vmem:[#allocation2 + $0x48] sm:$0xff]  ;;  %v57_v15 = vpack.c.bf16 %v47_v11, %v46_v10  ;;  %v54_v17 = vld [vmem:[#allocation2 + $0x50] sm:$0xff]  ;;  %v55_v18 = vld [vmem:[#allocation2 + $0x58] sm:$0xff] }
  0x2c   :  { %260 = vmatprep.mubr.msk.bf16.mxu0 %vm85_vm0, %v56_v9  ;;  %v60_v16 = vpack.c.bf16 %v53_v13, %v52_v12  ;;  %v61_v19 = vpack.c.bf16 %v55_v18, %v54_v17  ;;  %v239_v20 = vld [vmem:[%s437_s2] ss:$0 sm:$0xff]  ;;  %s363_s2 = smov [#allocation7]  }
  0x2d   :  { %275 = vmatpush3.bf16.msra.mxu1 %v284_v1  ;;  %259 = vmatpush3.bf16.msra.mxu0 %v284_v1  ;;  %s226_s13 = sshll.u32 %s363_s2, 4  ;;  %s227_s13 = int_to_ptr.vmem [resolvable:$true] %s226_s13 }
  0x2e   :  { %s329_s14 = scalar_lea.vmem %s227_s13, 1536  ;;  %p334_p3 = scmp.lt.s32.totalorder %s227_s13, %s227_s13 }
  0x2f   :  { %p330_p2 = scmp.ne.s32.totalorder %s227_s13, %s329_s14  ;;  %p335_p4 = scmp.lt.s32.totalorder %s329_s14, %s329_s14 }
  0x30   :  { %265 = vmatmul.mubr.msk.bf16.vlgmr.msra.gmra.mrb[0].mxu1 %vm85_vm0, %v59_v14  ;;  %261 = vmatmul.mubr.msk.bf16.vlgmr.msra.gmra.mrb[0].mxu0 %vm85_vm0, %v57_v15 }
  0x31   :  { %268 = vmatprep.mubr.msk.bf16.mxu1 %vm85_vm0, %v60_v16  ;;  %p336_p5 = por %p335_p4, %p334_p3 }
  0x33   :  { %p337_p6 = pnand %p336_p5, %p330_p2 }
  0x38   :  { %269 = vmatmul.mubr.msk.bf16.gmra.mrb[4].mxu1 %vm85_vm0, %v61_v19 }
 0x103   :  { %v266_v21 = vpop.f32.mrb[0].mxu1  ;;  %v262_v22 = vpop.f32.mrb[0].mxu0 }
 0x104   :  { %v163_v23 = vadd.f32 %v266_v21, %v239_v20  ;;  %v154_v24 = vpop.f32.mrb[1].mxu1  ;;  %v147_v25 = vadd.f32 %v262_v22, %v239_v20  ;;  %v138_v26 = vpop.f32.mrb[1].mxu0 }
 0x105   :  { %v155_v27 = vadd.f32 %v239_v20, %v154_v24  ;;  %v267_v28 = vpop.f32.mrb[2].mxu1  ;;  %v139_v29 = vadd.f32 %v239_v20, %v138_v26  ;;  %v263_v30 = vpop.f32.mrb[2].mxu0 }
 0x106   :  { %v191_v31 = vmax.f32 %v163_v23, 3.0  ;;  %v166_v32 = vadd.f32 %v267_v28, %v239_v20  ;;  %v157_v33 = vpop.f32.mrb[3].mxu1  ;;  %v187_v34 = vmax.f32 %v147_v25, 3.0  ;;  %v150_v35 = vadd.f32 %v263_v30, %v239_v20  ;;  %v141_v36 = vpop.f32.mrb[3].mxu0 }
 0x107   :  { %v189_v37 = vmax.f32 %v155_v27, 3.0  ;;  %v158_v38 = vadd.f32 %v239_v20, %v157_v33  ;;  %v185_v39 = vmax.f32 %v139_v29, 3.0  ;;  %v142_v40 = vadd.f32 %v239_v20, %v141_v36 }
 0x108   :  { %v203_v41 = vmin.f32 %v191_v31, -3.0  ;;  %v192_v42 = vmax.f32 %v166_v32, 3.0  ;;  %v199_v43 = vmin.f32 %v187_v34, -3.0  ;;  %v188_v44 = vmax.f32 %v150_v35, 3.0 }
 0x109   :  { %v201_v45 = vmin.f32 %v189_v37, -3.0  ;;  %v190_v46 = vmax.f32 %v158_v38, 3.0  ;;  %v197_v47 = vmin.f32 %v185_v39, -3.0  ;;  %v186_v48 = vmax.f32 %v142_v40, 3.0 }
 0x10a   :  { %215 = vst [vmem:[#allocation7 + $0x30] sm:$0xff] %v203_v41  ;;  %v204_v49 = vmin.f32 %v192_v42, -3.0  ;;  %211 = vst [vmem:[#allocation7 + $0x10] sm:$0xff] %v199_v43  ;;  %v200_v50 = vmin.f32 %v188_v44, -3.0 }
 0x10b   :  { %213 = vst [vmem:[#allocation7 + $0x20] sm:$0xff] %v201_v45  ;;  %v202_v51 = vmin.f32 %v190_v46, -3.0  ;;  %209 = vst [vmem:[#allocation7] sm:$0xff] %v197_v47  ;;  %v198_v52 = vmin.f32 %v186_v48, -3.0  ;;  %v270_v53 = vpop.f32.mrb[4].mxu1 }
 0x10c   :  { %216 = vst [vmem:[#allocation7 + $0x38] sm:$0xff] %v204_v49  ;;  %212 = vst [vmem:[#allocation7 + $0x18] sm:$0xff] %v200_v50  ;;  %v179_v54 = vadd.f32 %v270_v53, %v239_v20  ;;  %v170_v55 = vpop.f32.mrb[5].mxu1 }
 0x10d   :  { %214 = vst [vmem:[#allocation7 + $0x28] sm:$0xff] %v202_v51  ;;  %210 = vst [vmem:[#allocation7 + $0x8] sm:$0xff] %v198_v52  ;;  %v171_v56 = vadd.f32 %v239_v20, %v170_v55  ;;  %v271_v57 = vpop.f32.mrb[6].mxu1 }
 0x10e   :  { %v195_v58 = vmax.f32 %v179_v54, 3.0  ;;  %v182_v59 = vadd.f32 %v271_v57, %v239_v20  ;;  %v173_v60 = vpop.f32.mrb[7].mxu1 }
 0x10f   :  { %v193_v61 = vmax.f32 %v171_v56, 3.0  ;;  %v174_v62 = vadd.f32 %v239_v20, %v173_v60 }
 0x110   :  { %v207_v63 = vmin.f32 %v195_v58, -3.0  ;;  %v196_v0 = vmax.f32 %v182_v59, 3.0 }
 0x111   :  { %v205_v1 = vmin.f32 %v193_v61, -3.0  ;;  %v194_v2 = vmax.f32 %v174_v62, 3.0 }
 0x112   :  { %219 = vst [vmem:[#allocation7 + $0x50] sm:$0xff] %v207_v63  ;;  %v208_v3 = vmin.f32 %v196_v0, -3.0 }
 0x113   :  { %217 = vst [vmem:[#allocation7 + $0x40] sm:$0xff] %v205_v1  ;;  %v206_v4 = vmin.f32 %v194_v2, -3.0 }
 0x114   :  { %220 = vst [vmem:[#allocation7 + $0x58] sm:$0xff] %v208_v3 }
 0x115   :  { %218 = vst [vmem:[#allocation7 + $0x48] sm:$0xff] %v206_v4 }
 0x116   :  { %340 = shalt.err (!%p337_p6)
}
 0x117   :  { %s341_s17 = scalar_lea.hbm %s438_s3, 1536 }
 0x118   :  { %p342_p7 = scmp.ne.s32.totalorder %s438_s3, %s341_s17  ;;  %p345_p8 = scmp.lt.u32.totalorder %s341_s17, %s438_s3 }
 0x11a   :  { %p347_p9 = pnand %p345_p8, %p342_p7 }
 0x11c   :  { %350 = shalt.err (!%p347_p9)
}
 0x11d   :  { %232 = dma.vmem_to_hbm [thread:$0]  %s227_s13, 1536, %s438_s3, [#allocation4], %s358_s22, %s358_s22, %s359_s23  }
 0x11e   :  { %355 = dma.done.wait [#allocation4], 1536  }
 0x11f   :  { %356 = vsyncadd [#allocation4], 4294965760 }
 0x120   :  { %236 = vsyncpa [#allocation3], 1 }
 0x121   :  { %237 = vsyncpa [#allocation6], 1 }
 0x122   :  { %238 = vsyncpa [#allocation4], 1 }

</bundles_post_ra>
